<compile_context>
chip_gen: v6e
topology: v6e:2x2x1
jax: 0.10.0
libtpu: 0.0.40
codegen_flags: <defaults>
</compile_context>

<pallas_src>
import jax
import jax.numpy as jnp
from jax import lax
from jax.experimental import pallas as pl
from jax.experimental.pallas import tpu as pltpu

EMA_LOSS = 0.0        # MAENLoss.ema_loss class attribute (never updated in forward)
LAMB_MAX = 2.0        # lamb_max=2

_VMEM_LIMIT = 32 * 1024 * 1024   # safe on v5e/v6e (128 MiB) and v7x (64 MiB)
_DMA_BUDGET = 24 * 1024 * 1024   # double-buffered input bytes for the rec kernel


# ----------------------------------------------------------------------------
# Kernel 1: fused masked reconstruction error over all branches
#   per branch p, per tile t: num[p,t] = sum((img-pred)^2 * mask),
#                             den[p,t] = sum(mask)
# ----------------------------------------------------------------------------
def _make_rec_kernel(n_branches):
    def kernel(*refs):
        img_refs = refs[0:n_branches]
        pred_refs = refs[n_branches:2 * n_branches]
        mask_refs = refs[2 * n_branches:3 * n_branches]
        num_refs = refs[3 * n_branches:4 * n_branches]
        den_refs = refs[4 * n_branches:5 * n_branches]
        for p in range(n_branches):
            d = (img_refs[p][...].astype(jnp.float32)
                 - pred_refs[p][...].astype(jnp.float32))
            m = mask_refs[p][...].astype(jnp.float32)   # narrow dtype widened in-register
            num_refs[p][...] = jnp.sum(d * d * m).reshape(1, 1, 1)
            den_refs[p][...] = jnp.sum(m).reshape(1, 1, 1)
    return kernel


def _plan_layout(total, bytes_per_elem_all_streams):
    """View `total` elements as a lane-dense (rows, cols) slab; pick a row tile
    that keeps the double-buffered input DMA footprint under _DMA_BUDGET."""
    pad_unit = 32 * 128                       # int8-safe (32,128) tiling unit
    padded = ((total + pad_unit - 1) // pad_unit) * pad_unit
    cols = 128
    for c in (1024, 512, 256):
        if padded % (32 * c) == 0:
            cols = c
            break
    rows = padded // cols                     # always a multiple of 32
    per_step_budget = _DMA_BUDGET // 2        # 2 pipeline buffers
    bytes_per_row = cols * bytes_per_elem_all_streams
    tr = max(32, min(rows, (per_step_budget // bytes_per_row) // 32 * 32))
    while rows % tr:                          # terminates at 32 (rows % 32 == 0)
        tr -= 32
    return padded, rows, cols, tr


def _as_slab(x, total, padded, rows, cols):
    flat = x.reshape(-1)
    if padded != total:
        # zero padding is harmless: diff and mask are both 0 in the pad region
        flat = jnp.pad(flat, (0, padded - total))
    return flat.reshape(rows, cols)


def fused_rec_loss(imgs, preds, masks):
    # TODO(synk): reference rec_loss is broken PyTorch (`rec_err.mask.sum() /
    # mask().sum()`); implemented the evident intent: per-branch masked MSE
    # sum((img-pred)^2 * mask) / sum(mask), summed over branches.
    # TODO(synk): assumes all branches share a shape (true for MAE-N branches).
    n_branches = len(imgs)
    total = imgs[0].size
    bytes_all = sum(jnp.dtype(x.dtype).itemsize
                    for x in list(imgs) + list(preds) + list(masks))
    padded, rows, cols, tr = _plan_layout(total, bytes_all)
    n_tiles = rows // tr

    slabs = [_as_slab(x, total, padded, rows, cols)
             for x in list(imgs) + list(preds) + list(masks)]

    in_specs = [pl.BlockSpec((tr, cols), lambda t: (t, 0))
                for _ in range(3 * n_branches)]
    out_specs = tuple(pl.BlockSpec((1, 1, 1), lambda t: (t, 0, 0))
                      for _ in range(2 * n_branches))
    out_shape = tuple(jax.ShapeDtypeStruct((n_tiles, 1, 1), jnp.float32)
                      for _ in range(2 * n_branches))

    outs = pl.pallas_call(
        _make_rec_kernel(n_branches),
        out_shape=out_shape,
        grid=(n_tiles,),
        in_specs=in_specs,
        out_specs=out_specs,
        compiler_params=pltpu.CompilerParams(
            dimension_semantics=("parallel",),      # every tile independent
            vmem_limit_bytes=_VMEM_LIMIT),
    )(*slabs)

    rec = jnp.float32(0.0)
    for p in range(n_branches):
        num = jnp.sum(outs[p][:, 0, 0])
        den = jnp.sum(outs[n_branches + p][:, 0, 0])
        # guard against an all-zero mask poisoning the loss with inf/NaN
        rec = rec + num / jnp.maximum(den, 1e-12)
    return rec


# ----------------------------------------------------------------------------
# Kernel 2: fused pairwise linear CKA over stacked cls tokens (P, B, D)
#   Gram matrices are accumulated in a (P, B, B) f32 scratch over D-tiles; the
#   epilogue centers each Gram once and reuses it for all HSIC pairs.
# ----------------------------------------------------------------------------
def _cka_div_kernel(tok_ref, o_ref, gram_acc):
    k_idx = pl.program_id(0)

    @pl.when(k_idx == 0)
    def _():
        gram_acc[...] = jnp.zeros_like(gram_acc)

    x = tok_ref[...]                                   # (P, B, tk)
    gram_acc[...] += jnp.einsum('pbk,pck->pbc', x, x,
                                preferred_element_type=jnp.float32)

    @pl.when(k_idx == pl.num_programs(0) - 1)
    def _():
        # TODO(synk): epilogue holds the full (P,B,B) centered Grams in VMEM;
        # for very large batch B this should be tiled over B as well.
        k = gram_acc[...]
        colmean = jnp.mean(k, axis=1, keepdims=True)   # (P, 1, B)
        rowmean = jnp.mean(k, axis=2, keepdims=True)   # (P, B, 1)
        grandmean = jnp.mean(rowmean, axis=1, keepdims=True)
        c = k - colmean - rowmean + grandmean          # H K H
        n_br = c.shape[0]
        inv_norm = [lax.rsqrt(jnp.maximum(jnp.sum(c[i] * c[i]), 1e-16))
                    for i in range(n_br)]              # one rsqrt per branch (EUP)
        total = jnp.float32(0.0)
        for i in range(n_br):
            for j in range(i + 1, n_br):
                total = total + jnp.sum(c[i] * c[j]) * inv_norm[i] * inv_norm[j]
        o_ref[...] = total.reshape(1, 1)


def _choose_tk(d):
    if d % 128 != 0:
        return d            # full-dim block (allowed when block == array dim)
    tk = min(d, 512)
    while d % tk:
        tk -= 128
    return tk


def div_loss(cls_tokens):
    if len(cls_tokens) < 2:
        return jnp.float32(0.0)
    # TODO(synk): tokens kept in caller dtype; cast to bf16 upstream if desired
    # (MXU path), accumulation is always f32.
    toks = jnp.stack([t.reshape(t.shape[0], -1) for t in cls_tokens])  # (P, B, D)
    p, b, d = toks.shape
    tk = _choose_tk(d)
    n_k = d // tk
    out = pl.pallas_call(
        _cka_div_kernel,
        out_shape=jax.ShapeDtypeStruct((1, 1), jnp.float32),
        grid=(n_k,),
        in_specs=[pl.BlockSpec((p, b, tk), lambda k: (0, 0, k))],
        out_specs=pl.BlockSpec((1, 1), lambda k: (0, 0)),
        scratch_shapes=[pltpu.VMEM((p, b, b), jnp.float32)],
        compiler_params=pltpu.CompilerParams(
            dimension_semantics=("arbitrary",),
            vmem_limit_bytes=_VMEM_LIMIT),
    )(toks)
    return out[0, 0]


# ----------------------------------------------------------------------------
# MAENLoss forward (glue in plain JAX, hot paths in the kernels above)
# ----------------------------------------------------------------------------
def _ema(loss, alpha=0.9):
    # ema_loss is a constant 0 in the reference (never updated in forward)
    return alpha * EMA_LOSS + (1.0 - alpha) * loss


def maen_loss(imgs, preds, cls_tokens, masks):
    l_div = div_loss(cls_tokens)
    l_rec = fused_rec_loss(imgs, preds, masks)
    # TODO(synk): reference calls clamp(self.lamb, 0, lamb_max) on the *bound
    # method*; implemented the evident intent: clamp(lamb(L_rec, L_div), 0, lamb_max).
    lamb = jnp.clip(_ema(l_rec) / (_ema(l_div) + 1e-6) * 1.0, 0.0, LAMB_MAX)
    return l_rec + lamb * l_div


# ----------------------------------------------------------------------------
# pure-JAX reference (for correctness sanity check)
# ----------------------------------------------------------------------------
def _ref_loss(imgs, preds, cls_tokens, masks):
    def cka(x, y):
        x = x.reshape(x.shape[0], -1).astype(jnp.float32)
        y = y.reshape(y.shape[0], -1).astype(jnp.float32)

        def cent(k):
            n = k.shape[0]
            h = jnp.eye(n, dtype=jnp.float32) - jnp.ones((n, n), jnp.float32) / n
            return h @ k @ h

        cx = cent(x @ x.T)
        cy = cent(y @ y.T)
        hsic = jnp.sum(cx * cy)
        v1 = jnp.sqrt(jnp.sum(cx * cx))
        v2 = jnp.sqrt(jnp.sum(cy * cy))
        return hsic / jnp.maximum(v1 * v2, 1e-8)

    l_div = 0.0
    for i in range(len(cls_tokens)):
        for j in range(i + 1, len(cls_tokens)):
            l_div = l_div + cka(cls_tokens[i], cls_tokens[j])
    l_rec = 0.0
    for i in range(len(preds)):
        m = masks[i].astype(jnp.float32)
        diff = imgs[i].astype(jnp.float32) - preds[i].astype(jnp.float32)
        num = jnp.sum(diff * diff * m)
        den = jnp.sum(m)
        l_rec = l_rec + num / jnp.maximum(den, 1e-12)
    lamb = jnp.clip(_ema(l_rec) / (_ema(l_div) + 1e-6), 0.0, LAMB_MAX)
    return l_rec + lamb * l_div


if __name__ == "__main__":
    key = jax.random.PRNGKey(0)
    n_branches = 3
    B, C, H, W = 8, 4, 16, 16
    D = 32

    keys = jax.random.split(key, 3 * n_branches + n_branches)
    imgs, preds, masks, cls_tokens = [], [], [], []
    for b in range(n_branches):
        imgs.append(jax.random.normal(keys[3 * b + 0], (B, C, H, W), jnp.float32))
        preds.append(jax.random.normal(keys[3 * b + 1], (B, C, H, W), jnp.float32))
        # masks kept narrow (int8) in HBM; widened in-register inside the kernel
        masks.append((jax.random.uniform(keys[3 * b + 2], (B, C, H, W)) > 0.5)
                     .astype(jnp.int8))
        cls_tokens.append(
            jax.random.normal(keys[3 * n_branches + b], (B, D), jnp.float32))

    loss = maen_loss(imgs, preds, cls_tokens, masks)
    loss = jax.block_until_ready(loss)
    assert jnp.isfinite(loss), "loss is not finite"

    ref = jax.block_until_ready(_ref_loss(imgs, preds, cls_tokens, masks))
    assert jnp.allclose(loss, ref, rtol=1e-3, atol=1e-3), (loss, ref)

    print("KERNEL_OK")
</pallas_src>

<mosaic_0001>
module attributes {stable_mosaic.version = 11 : i64} {
  func.func @_cka_div_kernel(%arg0: i32, %arg1: memref<3x8x32xf32, #tpu.memory_space<vmem>>, %arg2: memref<1x1xf32, #tpu.memory_space<vmem>>, %arg3: memref<3x8x8xf32, #tpu.memory_space<vmem>>) attributes {dimension_semantics = [#tpu.dimension_semantics<arbitrary>], iteration_bounds = array<i64: 1>, scalar_prefetch = 0 : i64, scratch_operands = 1 : i64, tpu.core_type = #tpu.core_type<tc>, window_params = [{transform_indices = @transform_0, window_bounds = array<i64: 3, 8, 32>}, {pipeline_mode = #tpu.pipeline_mode<synchronous>, transform_indices = @transform_1, window_bounds = array<i64: 1, 1>}]} {
    %c0_i32 = arith.constant 0 : i32
    %0 = arith.cmpi eq, %arg0, %c0_i32 : i32
    %1 = arith.extui %0 : i1 to i32
    %c0_i32_0 = arith.constant 0 : i32
    %2 = arith.cmpi ne, %1, %c0_i32_0 : i32
    scf.if %2 {
      %cst_11 = arith.constant 0.000000e+00 : f32
      %11 = vector.broadcast %cst_11 : f32 to vector<3x8x8xf32>
      %c0_12 = arith.constant 0 : index
      %c0_13 = arith.constant 0 : index
      %c0_14 = arith.constant 0 : index
      %12 = vector.load %arg3[%c0_12, %c0_13, %c0_14] : memref<3x8x8xf32, #tpu.memory_space<vmem>>, vector<3x8x8xf32>
      tpu.vector_store %arg3[%c0_12, %c0_13, %c0_14], %11 {strides = array<i32>} : memref<3x8x8xf32, #tpu.memory_space<vmem>>, vector<3x8x8xf32>,
    } else {
    }
    %c0 = arith.constant 0 : index
    %c0_1 = arith.constant 0 : index
    %c0_2 = arith.constant 0 : index
    %3 = vector.load %arg1[%c0, %c0_1, %c0_2] : memref<3x8x32xf32, #tpu.memory_space<vmem>>, vector<3x8x32xf32>
    %c0_3 = arith.constant 0 : index
    %c0_4 = arith.constant 0 : index
    %c0_5 = arith.constant 0 : index
    %4 = vector.load %arg3[%c0_3, %c0_4, %c0_5] : memref<3x8x8xf32, #tpu.memory_space<vmem>>, vector<3x8x8xf32>
    "tpu.trace_start"() <{level = 10 : i32, message = "pbk,pck->pbc"}> : () -> ()
    %cst = arith.constant dense<0.000000e+00> : vector<3x8x8xf32>
    %5 = tpu.matmul %3, %3, %cst {dimension_numbers = #tpu.dot_dimension_numbers<[2], [2], [1], [1], [0, 0, 0, 1, 1, 1], [0], [0]>} : vector<3x8x32xf32>, vector<3x8x32xf32>, vector<3x8x8xf32> -> vector<3x8x8xf32>
    "tpu.trace_stop"() : () -> ()
    %6 = arith.addf %4, %5 : vector<3x8x8xf32>
    %c0_6 = arith.constant 0 : index
    %c0_7 = arith.constant 0 : index
    %c0_8 = arith.constant 0 : index
    %7 = vector.load %arg3[%c0_6, %c0_7, %c0_8] : memref<3x8x8xf32, #tpu.memory_space<vmem>>, vector<3x8x8xf32>
    tpu.vector_store %arg3[%c0_6, %c0_7, %c0_8], %6 {strides = array<i32>} : memref<3x8x8xf32, #tpu.memory_space<vmem>>, vector<3x8x8xf32>,
    %c0_i32_9 = arith.constant 0 : i32
    %8 = arith.cmpi eq, %arg0, %c0_i32_9 : i32
    %9 = arith.extui %8 : i1 to i32
    %c0_i32_10 = arith.constant 0 : i32
    %10 = arith.cmpi ne, %9, %c0_i32_10 : i32
    scf.if %10 {
      %c0_11 = arith.constant 0 : index
      %c0_12 = arith.constant 0 : index
      %c0_13 = arith.constant 0 : index
      %11 = vector.load %arg3[%c0_11, %c0_12, %c0_13] : memref<3x8x8xf32, #tpu.memory_space<vmem>>, vector<3x8x8xf32>
      %cst_14 = arith.constant dense<0.000000e+00> : vector<3x8xf32>
      %12 = vector.multi_reduction <add>, %11, %cst_14 [1] : vector<3x8x8xf32> to vector<3x8xf32>
      %13 = vector.shape_cast %12 : vector<3x8xf32> to vector<3x1x8xf32>
      %cst_15 = arith.constant 8.000000e+00 : f32
      %14 = vector.broadcast %cst_15 : f32 to vector<3x1x8xf32>
      %15 = arith.divf %13, %14 : vector<3x1x8xf32>
      %cst_16 = arith.constant dense<0.000000e+00> : vector<3x8xf32>
      %16 = vector.multi_reduction <add>, %11, %cst_16 [2] : vector<3x8x8xf32> to vector<3x8xf32>
      %17 = vector.shape_cast %16 : vector<3x8xf32> to vector<3x8x1xf32>
      %cst_17 = arith.constant 8.000000e+00 : f32
      %18 = vector.broadcast %cst_17 : f32 to vector<3x8x1xf32>
      %19 = arith.divf %17, %18 : vector<3x8x1xf32>
      %cst_18 = arith.constant dense<0.000000e+00> : vector<3x1xf32>
      %20 = vector.multi_reduction <add>, %19, %cst_18 [1] : vector<3x8x1xf32> to vector<3x1xf32>
      %21 = vector.shape_cast %20 : vector<3x1xf32> to vector<3x1x1xf32>
      %cst_19 = arith.constant 8.000000e+00 : f32
      %22 = vector.broadcast %cst_19 : f32 to vector<3x1x1xf32>
      %23 = arith.divf %21, %22 : vector<3x1x1xf32>
      %24 = vector.broadcast %15 : vector<3x1x8xf32> to vector<3x8x8xf32>
      %25 = arith.subf %11, %24 : vector<3x8x8xf32>
      %26 = vector.broadcast %19 : vector<3x8x1xf32> to vector<3x8x8xf32>
      %27 = arith.subf %25, %26 : vector<3x8x8xf32>
      %28 = vector.broadcast %23 : vector<3x1x1xf32> to vector<3x8x8xf32>
      %29 = arith.addf %27, %28 : vector<3x8x8xf32>
      %30 = vector.extract_strided_slice %29 {offsets = [0, 0, 0], sizes = [1, 8, 8], strides = [1, 1, 1]} : vector<3x8x8xf32> to vector<1x8x8xf32>
      %31 = vector.shape_cast %30 : vector<1x8x8xf32> to vector<8x8xf32>
      %32 = vector.extract_strided_slice %29 {offsets = [0, 0, 0], sizes = [1, 8, 8], strides = [1, 1, 1]} : vector<3x8x8xf32> to vector<1x8x8xf32>
      %33 = vector.shape_cast %32 : vector<1x8x8xf32> to vector<8x8xf32>
      %34 = arith.mulf %31, %33 : vector<8x8xf32>
      %35 = vector.shape_cast %34 : vector<8x8xf32> to vector<1x8x8xf32>
      %cst_20 = arith.constant dense<0.000000e+00> : vector<1xf32>
      %36 = vector.multi_reduction <add>, %35, %cst_20 [1, 2] : vector<1x8x8xf32> to vector<1xf32>
      %37 = vector.shape_cast %36 : vector<1xf32> to vector<1x1x1xf32>
      %38 = vector.extract %37[0, 0, 0] : f32 from vector<1x1x1xf32>
      %cst_21 = arith.constant 1.000000e-16 : f32
      %39 = arith.maximumf %38, %cst_21 : f32
      %40 = math.rsqrt %39 : f32
      %41 = vector.extract_strided_slice %29 {offsets = [1, 0, 0], sizes = [1, 8, 8], strides = [1, 1, 1]} : vector<3x8x8xf32> to vector<1x8x8xf32>
      %42 = vector.shape_cast %41 : vector<1x8x8xf32> to vector<8x8xf32>
      %43 = vector.extract_strided_slice %29 {offsets = [1, 0, 0], sizes = [1, 8, 8], strides = [1, 1, 1]} : vector<3x8x8xf32> to vector<1x8x8xf32>
      %44 = vector.shape_cast %43 : vector<1x8x8xf32> to vector<8x8xf32>
      %45 = arith.mulf %42, %44 : vector<8x8xf32>
      %46 = vector.shape_cast %45 : vector<8x8xf32> to vector<1x8x8xf32>
      %cst_22 = arith.constant dense<0.000000e+00> : vector<1xf32>
      %47 = vector.multi_reduction <add>, %46, %cst_22 [1, 2] : vector<1x8x8xf32> to vector<1xf32>
      %48 = vector.shape_cast %47 : vector<1xf32> to vector<1x1x1xf32>
      %49 = vector.extract %48[0, 0, 0] : f32 from vector<1x1x1xf32>
      %cst_23 = arith.constant 1.000000e-16 : f32
      %50 = arith.maximumf %49, %cst_23 : f32
      %51 = math.rsqrt %50 : f32
      %52 = vector.extract_strided_slice %29 {offsets = [2, 0, 0], sizes = [1, 8, 8], strides = [1, 1, 1]} : vector<3x8x8xf32> to vector<1x8x8xf32>
      %53 = vector.shape_cast %52 : vector<1x8x8xf32> to vector<8x8xf32>
      %54 = vector.extract_strided_slice %29 {offsets = [2, 0, 0], sizes = [1, 8, 8], strides = [1, 1, 1]} : vector<3x8x8xf32> to vector<1x8x8xf32>
      %55 = vector.shape_cast %54 : vector<1x8x8xf32> to vector<8x8xf32>
      %56 = arith.mulf %53, %55 : vector<8x8xf32>
      %57 = vector.shape_cast %56 : vector<8x8xf32> to vector<1x8x8xf32>
      %cst_24 = arith.constant dense<0.000000e+00> : vector<1xf32>
      %58 = vector.multi_reduction <add>, %57, %cst_24 [1, 2] : vector<1x8x8xf32> to vector<1xf32>
      %59 = vector.shape_cast %58 : vector<1xf32> to vector<1x1x1xf32>
      %60 = vector.extract %59[0, 0, 0] : f32 from vector<1x1x1xf32>
      %cst_25 = arith.constant 1.000000e-16 : f32
      %61 = arith.maximumf %60, %cst_25 : f32
      %62 = math.rsqrt %61 : f32
      %63 = vector.extract_strided_slice %29 {offsets = [0, 0, 0], sizes = [1, 8, 8], strides = [1, 1, 1]} : vector<3x8x8xf32> to vector<1x8x8xf32>
      %64 = vector.shape_cast %63 : vector<1x8x8xf32> to vector<8x8xf32>
      %65 = vector.extract_strided_slice %29 {offsets = [1, 0, 0], sizes = [1, 8, 8], strides = [1, 1, 1]} : vector<3x8x8xf32> to vector<1x8x8xf32>
      %66 = vector.shape_cast %65 : vector<1x8x8xf32> to vector<8x8xf32>
      %67 = arith.mulf %64, %66 : vector<8x8xf32>
      %68 = vector.shape_cast %67 : vector<8x8xf32> to vector<1x8x8xf32>
      %cst_26 = arith.constant dense<0.000000e+00> : vector<1xf32>
      %69 = vector.multi_reduction <add>, %68, %cst_26 [1, 2] : vector<1x8x8xf32> to vector<1xf32>
      %70 = vector.shape_cast %69 : vector<1xf32> to vector<1x1x1xf32>
      %71 = vector.extract %70[0, 0, 0] : f32 from vector<1x1x1xf32>
      %72 = arith.mulf %71, %40 : f32
      %73 = arith.mulf %72, %51 : f32
      %cst_27 = arith.constant 0.000000e+00 : f32
      %74 = arith.addf %cst_27, %73 : f32
      %75 = vector.extract_strided_slice %29 {offsets = [0, 0, 0], sizes = [1, 8, 8], strides = [1, 1, 1]} : vector<3x8x8xf32> to vector<1x8x8xf32>
      %76 = vector.shape_cast %75 : vector<1x8x8xf32> to vector<8x8xf32>
      %77 = vector.extract_strided_slice %29 {offsets = [2, 0, 0], sizes = [1, 8, 8], strides = [1, 1, 1]} : vector<3x8x8xf32> to vector<1x8x8xf32>
      %78 = vector.shape_cast %77 : vector<1x8x8xf32> to vector<8x8xf32>
      %79 = arith.mulf %76, %78 : vector<8x8xf32>
      %80 = vector.shape_cast %79 : vector<8x8xf32> to vector<1x8x8xf32>
      %cst_28 = arith.constant dense<0.000000e+00> : vector<1xf32>
      %81 = vector.multi_reduction <add>, %80, %cst_28 [1, 2] : vector<1x8x8xf32> to vector<1xf32>
      %82 = vector.shape_cast %81 : vector<1xf32> to vector<1x1x1xf32>
      %83 = vector.extract %82[0, 0, 0] : f32 from vector<1x1x1xf32>
      %84 = arith.mulf %83, %40 : f32
      %85 = arith.mulf %84, %62 : f32
      %86 = arith.addf %74, %85 : f32
      %87 = vector.extract_strided_slice %29 {offsets = [1, 0, 0], sizes = [1, 8, 8], strides = [1, 1, 1]} : vector<3x8x8xf32> to vector<1x8x8xf32>
      %88 = vector.shape_cast %87 : vector<1x8x8xf32> to vector<8x8xf32>
      %89 = vector.extract_strided_slice %29 {offsets = [2, 0, 0], sizes = [1, 8, 8], strides = [1, 1, 1]} : vector<3x8x8xf32> to vector<1x8x8xf32>
      %90 = vector.shape_cast %89 : vector<1x8x8xf32> to vector<8x8xf32>
      %91 = arith.mulf %88, %90 : vector<8x8xf32>
      %92 = vector.shape_cast %91 : vector<8x8xf32> to vector<1x8x8xf32>
      %cst_29 = arith.constant dense<0.000000e+00> : vector<1xf32>
      %93 = vector.multi_reduction <add>, %92, %cst_29 [1, 2] : vector<1x8x8xf32> to vector<1xf32>
      %94 = vector.shape_cast %93 : vector<1xf32> to vector<1x1x1xf32>
      %95 = vector.extract %94[0, 0, 0] : f32 from vector<1x1x1xf32>
      %96 = arith.mulf %95, %51 : f32
      %97 = arith.mulf %96, %62 : f32
      %98 = arith.addf %86, %97 : f32
      %99 = vector.broadcast %98 : f32 to vector<1x1xf32>
      %c0_30 = arith.constant 0 : index
      %c0_31 = arith.constant 0 : index
      %100 = vector.load %arg2[%c0_30, %c0_31] : memref<1x1xf32, #tpu.memory_space<vmem>>, vector<1x1xf32>
      tpu.vector_store %arg2[%c0_30, %c0_31], %99 {strides = array<i32>} : memref<1x1xf32, #tpu.memory_space<vmem>>, vector<1x1xf32>,
    } else {
    }
    return
  }
  func.func @transform_0(%arg0: i32) -> (i32, i32, i32) {
    %c0_i32 = arith.constant 0 : i32
    %c0_i32_0 = arith.constant 0 : i32
    %c0_i32_1 = arith.constant 0 : i32
    return %c0_i32, %c0_i32_0, %arg0 : i32, i32, i32
  }
  func.func @transform_1(%arg0: i32) -> (i32, i32) {
    %c0_i32 = arith.constant 0 : i32
    %c0_i32_0 = arith.constant 0 : i32
    %c0_i32_1 = arith.constant 0 : i32
    return %c0_i32, %c0_i32_0 : i32, i32
  }
}

</mosaic_0001>

<bundles_post_ra>
// kernel: tpu_custom_call.1
= control target key start
LH: loop header
LB: loop body
LE: loop exit
PB: predicated region body
PF: predicated region fallthrough
CT: control target
= control target key end

     0   :  { %6 = vsyncpa [#allocation4], 0  ;;  %s593_s0 = inlined_call_operand.hbm [shape: f32[3,8,32], index: 0, kind: input, shape index: {}]   ;;  %s594_s1 = inlined_call_operand.hbm [shape: f32[1,1], index: 1, kind: output, shape index: {}]  }
   0x1   :  { %7 = vsyncpa [#allocation5], 0  ;;  %s541_s6 = smov [#allocation3]  }
   0x2   :  { %s13_s7 = sshll.u32 %s541_s6, 4  ;;  %s14_s7 = int_to_ptr.vmem [resolvable:$true] %s13_s7 }
   0x3   :  { %s505_s8 = scalar_lea.vmem %s14_s7, 384  ;;  %p510_p1 = scmp.lt.s32.totalorder %s14_s7, %s14_s7 }
   0x4   :  { %p506_p0 = scmp.ne.s32.totalorder %s14_s7, %s505_s8  ;;  %p511_p2 = scmp.lt.s32.totalorder %s505_s8, %s505_s8 }
   0x6   :  { %p512_p3 = por %p511_p2, %p510_p1 }
   0x8   :  { %p513_p4 = pnand %p512_p3, %p506_p0 }
   0xa   :  { %516 = shalt.err (!%p513_p4)
}
   0xb   :  { %s542_s9 = smov 128   ;;  %s543_s10 = smov 8  }
   0xc   :  { %19 = dma.hbm_to_vmem [thread:$0]  %s593_s0, 384, %s14_s7, [#allocation4], %s542_s9, %s542_s9, %s543_s10  }
   0xd   :  { %537 = dma.done.wait [#allocation4], 384  }
   0xe   :  { %538 = vsyncadd [#allocation4], 4294966912  ;;  %vm27_vm0 = vcmask 64512   ;;  %v544_v0 = vmov 0.0   ;;  %vm545_vm1 = vmmov 0   ;;  %vm37_vm2 = vcmask 261120  }
   0xf   :  { %451 = vmatprep.subr.mxu0 %v544_v0  ;;  %453 = vmatprep.mubr.msk.f32.mxu0 %vm545_vm1, %v544_v0  ;;  %28 = vst.msk [vmem:[#allocation2] sm:$0xff] %vm27_vm0, %v544_v0  ;;  %29 = vst.msk [vmem:[#allocation2 + $0x8] sm:$0xff] %vm27_vm0, %v544_v0  ;;  %v31_v1 = vld [vmem:[#allocation3] sm:$0xff]  ;;  %v32_v2 = vld [vmem:[#allocation3 + $0x8] sm:$0xff]  ;;  %s546_s13 = smov 1e-16  }
  0x10   :  { %30 = vst.msk [vmem:[#allocation2 + $0x10] sm:$0xff] %vm27_vm0, %v544_v0  ;;  %456 = vmatprep.subr.mxu1 %v544_v0  ;;  %458 = vmatprep.mubr.msk.f32.mxu1 %vm545_vm1, %v544_v0  ;;  %v33_v3 = vld [vmem:[#allocation3 + $0x10] sm:$0xff]  ;;  %s547_s3 = smov [#allocation6]   ;;  %vm422_vm3 = vcmask 0  }
  0x11   :  { %452 = vmatpush3.xpose.msk.msra.mxu0 %vm37_vm2, %v31_v1  ;;  %457 = vmatpush3.xpose.msk.msra.mxu1 %vm37_vm2, %v32_v2  ;;  %s430_s4 = sshll.u32 %s547_s3, 4  ;;  %s431_s4 = int_to_ptr.vmem [resolvable:$true] %s430_s4 }
  0x12   :  { %461 = vmatprep.subr.mxu0 %v544_v0  ;;  %s517_s6 = scalar_lea.vmem %s431_s4, 16  ;;  %s521_s7 = scalar_lea.vmem %s431_s4, 32 }
  0x13   :  { %p518_p5 = scmp.ne.s32.totalorder %s431_s4, %s517_s6  ;;  %p522_p6 = scmp.lt.s32.totalorder %s431_s4, %s431_s4 }
  0x14   :  { %454 = vmatmul.mubr.msk.f32.vlgmr.msra.gmra.mxu0 %vm37_vm2, %v31_v1  ;;  %459 = vmatmul.mubr.msk.f32.vlgmr.msra.gmra.mxu1 %vm37_vm2, %v32_v2  ;;  %p523_p7 = scmp.lt.s32.totalorder %s521_s7, %s517_s6 }
  0x15   :  { %462 = vmatpush3.xpose.msk.msra.mxu0 %vm37_vm2, %v33_v3  ;;  %463 = vmatprep.mubr.msk.f32.mxu0 %vm545_vm1, %v544_v0 }
  0x16   :  { %v34_v4 = vld [vmem:[#allocation2] sm:$0xff]  ;;  %v35_v5 = vld [vmem:[#allocation2 + $0x8] sm:$0xff]  ;;  %p524_p8 = por %p523_p7, %p522_p6 }
  0x17   :  { %v36_v12 = vld [vmem:[#allocation2 + $0x10] sm:$0xff] }
  0x18   :  { %464 = vmatmul.mubr.msk.f32.vlgmr.msra.gmra.mxu0 %vm37_vm2, %v33_v3  ;;  %p525_p9 = pnand %p524_p8, %p518_p5 }
  0xd4   :  { %v107_v6 = vpop.f32.mrf.mxu0  ;;  %v180_v7 = vpop.f32.mrf.mxu1 }
  0xd5   :  { %v257_v8 = vadd.f32 %v107_v6, %v34_v4  ;;  %v258_v9 = vadd.f32 %v180_v7, %v35_v5 }
  0xd6   :  { %v455_v10 = vpop.f32.mrf.mxu0  ;;  %v460_v11 = vpop.f32.mrf.mxu1 }
  0xd7   :  { %261 = vst.msk [vmem:[#allocation2] sm:$0xff] %vm27_vm0, %v257_v8  ;;  %262 = vst.msk [vmem:[#allocation2 + $0x8] sm:$0xff] %vm27_vm0, %v258_v9 }
  0xd8   :  { %v253_v13 = vpop.f32.mrf.mxu0 }
  0xd9   :  { %v259_v14 = vadd.f32 %v253_v13, %v36_v12 }
  0xda   :  { %v465_v15 = vpop.f32.mrf.mxu0 }
  0xdb   :  { %263 = vst.msk [vmem:[#allocation2 + $0x10] sm:$0xff] %vm27_vm0, %v259_v14 }
  0xde   :  { %v267_v16 = vld [vmem:[#allocation2] sm:$0xff]  ;;  %v268_v17 = vld [vmem:[#allocation2 + $0x8] sm:$0xff] }
  0xdf   :  { %v270_v18 = vsel %vm27_vm0, %v267_v16, 0.0  ;;  %v277_v19 = vsel %vm27_vm0, %v268_v17, 0.0 }
  0xe0   :  { %295 = vadd.xlane.f32.xlu0 %v270_v18  ;;  %v271_v20 = vrot.slane %v270_v18, 4  ;;  %v278_v21 = vrot.slane %v277_v19, 4 }
  0xe2   :  { %v272_v22 = vadd.f32 %v271_v20, %v270_v18  ;;  %v279_v23 = vadd.f32 %v278_v21, %v277_v19  ;;  %v269_v60 = vld [vmem:[#allocation2 + $0x10] sm:$0xff] }
  0xe3   :  { %v284_v63 = vsel %vm27_vm0, %v269_v60, 0.0 }
  0xe4   :  { %v273_v24 = vrot.slane %v272_v22, 2  ;;  %v280_v25 = vrot.slane %v279_v23, 2  ;;  %297 = vadd.xlane.f32.xlu0 %v277_v19  ;;  %v285_v2 = vrot.slane %v284_v63, 4 }
  0xe6   :  { %v274_v26 = vadd.f32 %v273_v24, %v272_v22  ;;  %v281_v27 = vadd.f32 %v280_v25, %v279_v23  ;;  %v286_v3 = vadd.f32 %v285_v2, %v284_v63 }
  0xe8   :  { %v275_v28 = vrot.slane %v274_v26, 1  ;;  %v282_v29 = vrot.slane %v281_v27, 1  ;;  %v287_v4 = vrot.slane %v286_v3, 2 }
  0xea   :  { %v276_v30 = vadd.f32 %v275_v28, %v274_v26  ;;  %v283_v31 = vadd.f32 %v282_v29, %v281_v27  ;;  %v288_v6 = vadd.f32 %v287_v4, %v286_v3 }
  0xec   :  { %v292_v32 = vmul.f32 0.125, %v276_v30  ;;  %v293_v33 = vmul.f32 0.125, %v283_v31  ;;  %v289_v10 = vrot.slane %v288_v6, 1 }
  0xee   :  { %v325_v34 = vsub.f32 %v267_v16, %v292_v32  ;;  %v326_v35 = vsub.f32 %v268_v17, %v293_v33  ;;  %v290_v15 = vadd.f32 %v289_v10, %v288_v6 }
  0xf0   :  { %v294_v20 = vmul.f32 0.125, %v290_v15 }
  0xf2   :  { %v327_v23 = vsub.f32 %v269_v60, %v294_v20 }
 0x169   :  { %v296_v36 = vpop.xlane.xlu0 %295 }
 0x16a   :  { %v301_v37 = vmul.f32 0.125, %v296_v36 }
 0x16c   :  { %v304_v38 = vrot.slane %v301_v37, 4  ;;  %v328_v50 = vsub.f32 %v325_v34, %v301_v37 }
 0x16d   :  { %v298_v39 = vpop.xlane.xlu0 %297 }
 0x16e   :  { %v305_v40 = vadd.f32 %v304_v38, %v301_v37  ;;  %v302_v41 = vmul.f32 0.125, %v298_v39 }
 0x170   :  { %v306_v42 = vrot.slane %v305_v40, 2  ;;  %v310_v43 = vrot.slane %v302_v41, 4  ;;  %v329_v55 = vsub.f32 %v326_v35, %v302_v41 }
 0x172   :  { %v307_v44 = vadd.f32 %v306_v42, %v305_v40  ;;  %v311_v45 = vadd.f32 %v310_v43, %v302_v41 }
 0x174   :  { %v308_v46 = vrot.slane %v307_v44, 1  ;;  %v312_v47 = vrot.slane %v311_v45, 2 }
 0x176   :  { %v313_v48 = vadd.f32 %v312_v47, %v311_v45  ;;  %v309_v49 = vadd.f32 %v308_v46, %v307_v44 }
 0x178   :  { %v314_v51 = vrot.slane %v313_v48, 1  ;;  %v322_v52 = vmul.f32 0.125, %v309_v49 }
 0x17a   :  { %v315_v53 = vadd.f32 %v314_v51, %v313_v48  ;;  %v331_v54 = vadd.f32 %v328_v50, %v322_v52 }
 0x17c   :  { %v334_v56 = vmul.f32 %v331_v54, %v331_v54  ;;  %v323_v57 = vmul.f32 0.125, %v315_v53 }
 0x17e   :  { %v335_v58 = vsel %vm27_vm0, %v334_v56, 0.0  ;;  %v332_v59 = vadd.f32 %v329_v55, %v323_v57 }
 0x17f   :  { %336 = vadd.xlane.f32.xlu1 %v335_v58 }
 0x180   :  { %v349_v61 = vmul.f32 %v332_v59, %v332_v59  ;;  %v379_v0 = vmul.f32 %v332_v59, %v331_v54 }
 0x182   :  { %v350_v62 = vsel %vm27_vm0, %v349_v61, 0.0  ;;  %v380_v1 = vsel %vm27_vm0, %v379_v0, 0.0 }
 0x183   :  { %351 = vadd.xlane.f32.xlu0 %v350_v62  ;;  %299 = vadd.xlane.f32.xlu1 %v284_v63 }
 0x187   :  { %381 = vadd.xlane.f32.xlu0 %v380_v1 }
 0x208   :  { %v337_v5 = vpop.xlane.xlu1 %336 }
 0x209   :  { %v338_v7 = vrot.slane %v337_v5, 4 }
 0x20b   :  { %v339_v8 = vadd.f32 %v338_v7, %v337_v5 }
 0x20c   :  { %v300_v9 = vpop.xlane.xlu1 %299  ;;  %v352_v34 = vpop.xlane.xlu0 %351 }
 0x20d   :  { %v340_v11 = vrot.slane %v339_v8, 2  ;;  %v303_v12 = vmul.f32 0.125, %v300_v9  ;;  %v353_v35 = vrot.slane %v352_v34, 4 }
 0x20f   :  { %v316_v13 = vrot.slane %v303_v12, 4  ;;  %v341_v14 = vadd.f32 %v340_v11, %v339_v8  ;;  %v330_v25 = vsub.f32 %v327_v23, %v303_v12  ;;  %v354_v36 = vadd.f32 %v353_v35, %v352_v34 }
 0x210   :  { %v382_v52 = vpop.xlane.xlu0 %381 }
 0x211   :  { %v317_v16 = vadd.f32 %v316_v13, %v303_v12  ;;  %v342_v17 = vrot.slane %v341_v14, 1  ;;  %v355_v38 = vrot.slane %v354_v36, 2  ;;  %v383_v55 = vrot.slane %v382_v52, 4 }
 0x213   :  { %v318_v18 = vrot.slane %v317_v16, 2  ;;  %v343_v19 = vadd.f32 %v342_v17, %v341_v14  ;;  %v356_v39 = vadd.f32 %v355_v38, %v354_v36  ;;  %v384_v58 = vadd.f32 %v383_v55, %v382_v52 }
 0x215   :  { %v319_v21 = vadd.f32 %v318_v18, %v317_v16  ;;  %466 = vpush %v343_v19  ;;  %v357_v40 = vrot.slane %v356_v39, 1  ;;  %v385_v62 = vrot.slane %v384_v58, 2 }
 0x217   :  { %v320_v22 = vrot.slane %v319_v21, 1  ;;  %v358_v42 = vadd.f32 %v357_v40, %v356_v39  ;;  %v386_v1 = vadd.f32 %v385_v62, %v384_v58 }
 0x219   :  { %v321_v24 = vadd.f32 %v320_v22, %v319_v21  ;;  %v387_v4 = vrot.slane %v386_v1, 1 }
 0x21b   :  { %v324_v26 = vmul.f32 0.125, %v321_v24  ;;  %v388_v8 = vadd.f32 %v387_v4, %v386_v1 }
 0x21d   :  { %v333_v27 = vadd.f32 %v330_v25, %v324_v26 }
 0x21f   :  { %v407_v28 = vmul.f32 %v333_v27, %v332_v59  ;;  %v364_v29 = vmul.f32 %v333_v27, %v333_v27  ;;  %v393_v32 = vmul.f32 %v333_v27, %v331_v54 }
 0x221   :  { %v408_v30 = vsel %vm27_vm0, %v407_v28, 0.0  ;;  %v365_v31 = vsel %vm27_vm0, %v364_v29, 0.0  ;;  %v394_v33 = vsel %vm27_vm0, %v393_v32, 0.0 }
 0x222   :  { %409 = vadd.xlane.f32.xlu0 %v408_v30  ;;  %366 = vadd.xlane.f32.xlu1 %v365_v31 }
 0x226   :  { %395 = vadd.xlane.f32.xlu1 %v394_v33 }
 0x246   :  { %s467_s0 = spop %466 }
 0x247   :  { %s345_s14 = smax.f32 %s546_s13, %s467_s0 }
 0x248   :  { %v346_v37 = vstv %s345_s14 }
 0x249   :  { %491 = vrsqrt.f32 %v346_v37 }
 0x256   :  { %v492_v41 = vpop.eup %491 }
 0x257   :  { %468 = vpush %v492_v41 }
 0x258   :  { %470 = vpush %v358_v42 }
 0x288   :  { %s580_s15 = spop %468 }
 0x289   :  { %s471_s16 = spop %470 }
 0x28a   :  { %s360_s17 = smax.f32 %s546_s13, %s471_s16 }
 0x28b   :  { %v361_v43 = vstv %s360_s17 }
 0x28c   :  { %493 = vrsqrt.f32 %v361_v43 }
 0x299   :  { %v494_v44 = vpop.eup %493 }
 0x29a   :  { %472 = vpush %v494_v44 }
 0x2ab   :  { %v367_v45 = vpop.xlane.xlu1 %366  ;;  %v410_v54 = vpop.xlane.xlu0 %409 }
 0x2ac   :  { %v368_v46 = vrot.slane %v367_v45, 4  ;;  %v411_v57 = vrot.slane %v410_v54, 4 }
 0x2ae   :  { %v369_v47 = vadd.f32 %v368_v46, %v367_v45  ;;  %v412_v60 = vadd.f32 %v411_v57, %v410_v54 }
 0x2af   :  { %v396_v53 = vpop.xlane.xlu1 %395 }
 0x2b0   :  { %v370_v48 = vrot.slane %v369_v47, 2  ;;  %v397_v56 = vrot.slane %v396_v53, 4  ;;  %v413_v0 = vrot.slane %v412_v60, 2 }
 0x2b2   :  { %v371_v49 = vadd.f32 %v370_v48, %v369_v47  ;;  %v398_v59 = vadd.f32 %v397_v56, %v396_v53  ;;  %v414_v3 = vadd.f32 %v413_v0, %v412_v60 }
 0x2b4   :  { %v372_v50 = vrot.slane %v371_v49, 1  ;;  %v399_v63 = vrot.slane %v398_v59, 2  ;;  %v415_v6 = vrot.slane %v414_v3, 1 }
 0x2b6   :  { %v373_v51 = vadd.f32 %v372_v50, %v371_v49  ;;  %v400_v2 = vadd.f32 %v399_v63, %v398_v59  ;;  %v416_v10 = vadd.f32 %v415_v6, %v414_v3 }
 0x2b8   :  { %474 = vpush %v373_v51  ;;  %v401_v5 = vrot.slane %v400_v2, 1 }
 0x2ba   :  { %v402_v9 = vadd.f32 %v401_v5, %v400_v2 }
 0x2cb   :  { %s583_s18 = spop %472 }
 0x2e9   :  { %s475_s19 = spop %474 }
 0x2ea   :  { %s375_s20 = smax.f32 %s546_s13, %s475_s19 }
 0x2eb   :  { %v376_v61 = vstv %s375_s20 }
 0x2ec   :  { %495 = vrsqrt.f32 %v376_v61 }
 0x2f9   :  { %v496_v7 = vpop.eup %495 }
 0x2fa   :  { %476 = vpush %v496_v7 }
 0x2fb   :  { %478 = vpush %v388_v8 }
 0x2fc   :  { %480 = vpush %v402_v9 }
 0x2fd   :  { %482 = vpush %v416_v10 }
 0x32b   :  { %s477_s21 = spop %476 }
 0x32c   :  { %s479_s22 = spop %478 }
 0x32d   :  { %s390_s23 = smul.f32 %s479_s22, %s580_s15  ;;  %s481_s24 = spop %480 }
 0x32e   :  { %s404_s25 = smul.f32 %s481_s24, %s580_s15  ;;  %s483_s26 = spop %482 }
 0x32f   :  { %s391_s27 = smul.f32 %s583_s18, %s390_s23 }
 0x330   :  { %s405_s28 = smul.f32 %s477_s21, %s404_s25 }
 0x331   :  { %s418_s29 = smul.f32 %s483_s26, %s583_s18 }
 0x332   :  { %s406_s30 = sadd.f32 %s405_s28, %s391_s27 }
 0x333   :  { %s419_s2 = smul.f32 %s477_s21, %s418_s29 }
 0x335   :  { %s420_s5 = sadd.f32 %s419_s2, %s406_s30 }
 0x337   :  { %v421_v11 = vstv %s420_s5 }
 0x338   :  { %423 = vst.msk [vmem:[#allocation6] sm:$0x1] %vm422_vm3, %v421_v11 }
 0x339   :  { %528 = shalt.err (!%p525_p9)
}
 0x33a   :  { %433 = dma.vmem_to_hbm [thread:$0]  %s431_s4, 16, %s594_s1, [#allocation5]  }
 0x33b   :  { %539 = dma.done.wait [#allocation5], 16  }
 0x33c   :  { %540 = vsyncadd [#allocation5], 4294967280 }
 0x33d   :  { %437 = vsyncpa [#allocation4], 1 }
 0x33e   :  { %438 = vsyncpa [#allocation5], 1 }

</bundles_post_ra>
